<compile_context>
chip_gen: v7x
topology: tpu7x:2x2x1
jax: 0.10.0
libtpu: 0.0.40
codegen_flags: <defaults>
</compile_context>

<pallas_src>
import jax
import jax.numpy as jnp
from jax import lax
from jax.experimental import pallas as pl
from jax.experimental.pallas import tpu as pltpu


def adain_kernel(x_ref, mu_ref, sigma_ref, o_ref):
    x = x_ref[...]                                       # (TN, C), native dtype
    c = x.shape[1]
    inv_c = jnp.float32(1.0 / c)

    # Pass 1: per-row mean, accumulated in f32 (no full-tile f32 temporary).
    mean = jnp.sum(x, axis=1, keepdims=True, dtype=jnp.float32) * inv_c   # (TN, 1) f32

    # Centered values in the native dtype (exact for f32; packed vregs for bf16).
    centered = x - mean.astype(x.dtype)                  # (TN, C)

    # Pass 2: two-pass variance (matches the PyTorch formula, no cancellation).
    ss = jnp.sum(centered * centered, axis=1, keepdims=True, dtype=jnp.float32)
    var = (ss + jnp.float32(2.3e-08)) * inv_c
    inv_std = lax.rsqrt(var)                             # per-row, EUP (TN, 1) f32

    sig = sigma_ref[...].astype(jnp.float32)             # (TN, 1)
    a = (sig * inv_std).astype(x.dtype)                  # sigma / std     (TN, 1)
    b = (sig * mu_ref[...].astype(jnp.float32)).astype(x.dtype)   # sigma * mu

    # out = sigma * ((x - mean)/std + mu) == centered * a + b
    o_ref[...] = (centered * a + b).astype(o_ref.dtype)


def adain(x, mu, sigma, *, target_block_bytes=4 * 1024 * 1024):
    """AdaIN forward. x: (N, C); mu, sigma: (N, 1). Returns (N, C)."""
    N, C = x.shape
    assert mu.shape == (N, 1) and sigma.shape == (N, 1)

    itemsize = jnp.dtype(x.dtype).itemsize
    # Sublane multiple for the dtype: 8 (f32), 16 (bf16), 32 (int8/fp8).
    sub = max(8, 32 // itemsize)

    # Rows per block so the x block is ~target_block_bytes (no artificial cap).
    rows = (target_block_bytes // max(C * itemsize, 1)) // sub * sub
    rows = int(max(sub, rows))

    # Never run a big input as a single grid step: keep >= ~4 steps so DMA and
    # compute overlap and both v7x TensorCores get work.
    if N * C * itemsize > (1 << 20):
        rows = min(rows, max(sub, (N // 4) // sub * sub))

    if rows >= N:
        tile_n = N            # single full-extent block (legal for any N)
    else:
        tile_n = rows         # ragged last block handled by Pallas masking
    grid = (int(pl.cdiv(N, tile_n)),)

    return pl.pallas_call(
        adain_kernel,
        out_shape=jax.ShapeDtypeStruct((N, C), x.dtype),
        grid_spec=pltpu.PrefetchScalarGridSpec(
            num_scalar_prefetch=0,
            grid=grid,
            in_specs=[
                pl.BlockSpec((tile_n, C), lambda i: (i, 0)),
                pl.BlockSpec((tile_n, 1), lambda i: (i, 0)),
                pl.BlockSpec((tile_n, 1), lambda i: (i, 0)),
            ],
            out_specs=pl.BlockSpec((tile_n, C), lambda i: (i, 0)),
        ),
        compiler_params=pltpu.CompilerParams(
            # Row blocks are independent -> eligible for 2-TC sharding on v7x.
            # TODO(synk): confirm 2-TC split on v7x traces; use pltpu.CORE_PARALLEL
            # (or a core_map with a leading size-2 axis) if one core sits idle.
            dimension_semantics=("parallel",),
            # Double-buffered 4 MiB x + out blocks ~= 16 MiB; 48 MiB leaves headroom
            # under v7x's 64 MiB physical VMEM and lifts v5e's 16 MiB scoped default.
            vmem_limit_bytes=48 * 1024 * 1024,
        ),
    )(x, mu, sigma)


def adain_ref(x, mu, sigma):
    """Pure-JAX reference mirroring the PyTorch forward exactly."""
    C = x.shape[1]
    x_mean = jnp.sum(x, axis=1) / C                                   # (N,)
    x_std = jnp.sqrt((jnp.sum((x.T - x_mean).T ** 2, axis=1) + 2.3e-08) / C)
    x_reduce_mean = x.T - x_mean                                      # (C, N)
    x_norm = x_reduce_mean / x_std                                    # (C, N)
    return (jnp.squeeze(sigma, 1) * (x_norm + jnp.squeeze(mu, 1))).T  # (N, C)


if __name__ == "__main__":
    key = jax.random.PRNGKey(0)
    ks = jax.random.split(key, 9)

    # 1) Small single-block path.
    N, C = 8, 256
    x = jax.random.normal(ks[0], (N, C), dtype=jnp.float32)
    mu = jax.random.normal(ks[1], (N, 1), dtype=jnp.float32)
    sigma = jax.random.uniform(ks[2], (N, 1), dtype=jnp.float32, minval=0.5, maxval=1.5)
    out = jax.block_until_ready(adain(x, mu, sigma))
    ref = adain_ref(x, mu, sigma)
    assert out.shape == (N, C)
    assert jnp.allclose(out, ref, atol=1e-5, rtol=1e-5), "mismatch vs reference (small)"

    # 2) Multi-step grid with a ragged last block (no pad, no slice), f32.
    N2, C2 = 100, 256
    x2 = jax.random.normal(ks[3], (N2, C2), dtype=jnp.float32)
    mu2 = jax.random.normal(ks[4], (N2, 1), dtype=jnp.float32)
    sigma2 = jax.random.uniform(ks[5], (N2, 1), dtype=jnp.float32, minval=0.5, maxval=1.5)
    out2 = jax.block_until_ready(adain(x2, mu2, sigma2, target_block_bytes=16 * 1024))
    ref2 = adain_ref(x2, mu2, sigma2)
    assert out2.shape == (N2, C2)
    assert jnp.allclose(out2, ref2, atol=1e-5, rtol=1e-5), "mismatch vs reference (ragged tiled)"

    # 3) Non-zero-mean rows: two-pass variance must track the reference.
    x3 = x2 + 10.0 * jax.random.normal(ks[6], (N2, 1), dtype=jnp.float32)
    out3 = jax.block_until_ready(adain(x3, mu2, sigma2, target_block_bytes=16 * 1024))
    ref3 = adain_ref(x3, mu2, sigma2)
    assert jnp.allclose(out3, ref3, atol=1e-3, rtol=1e-3), "mismatch vs reference (shifted mean)"

    # 4) bf16 path: native-dtype elementwise pass, f32 stat accumulation,
    #    sublane multiple of 16, ragged (48 % 32 != 0) last block.
    N4, C4 = 48, 256
    x4 = jax.random.normal(ks[7], (N4, C4), dtype=jnp.float32).astype(jnp.bfloat16)
    mu4 = jax.random.normal(ks[8], (N4, 1), dtype=jnp.float32).astype(jnp.bfloat16)
    sigma4 = jnp.full((N4, 1), 1.25, dtype=jnp.bfloat16)
    out4 = jax.block_until_ready(adain(x4, mu4, sigma4, target_block_bytes=16 * 1024))
    ref4 = adain_ref(x4.astype(jnp.float32), mu4.astype(jnp.float32), sigma4.astype(jnp.float32))
    assert out4.shape == (N4, C4)
    assert jnp.allclose(out4.astype(jnp.float32), ref4, atol=0.25, rtol=0.05), \
        "mismatch vs reference (bf16)"

    print("KERNEL_OK")
</pallas_src>

<mosaic_0001>
module attributes {stable_mosaic.version = 11 : i64} {
  func.func @adain_kernel(%arg0: i32, %arg1: memref<8x256xf32, #tpu.memory_space<vmem>>, %arg2: memref<8x1xf32, #tpu.memory_space<vmem>>, %arg3: memref<8x1xf32, #tpu.memory_space<vmem>>, %arg4: memref<8x256xf32, #tpu.memory_space<vmem>>) attributes {dimension_semantics = [#tpu.dimension_semantics<parallel>], iteration_bounds = array<i64: 1>, scalar_prefetch = 0 : i64, scratch_operands = 0 : i64, tpu.core_type = #tpu.core_type<tc>, window_params = [{transform_indices = @transform_0, window_bounds = array<i64: 8, 256>}, {transform_indices = @transform_1, window_bounds = array<i64: 8, 1>}, {transform_indices = @transform_2, window_bounds = array<i64: 8, 1>}, {transform_indices = @transform_3, window_bounds = array<i64: 8, 256>}]} {
    %c0 = arith.constant 0 : index
    %c0_0 = arith.constant 0 : index
    %0 = vector.load %arg1[%c0, %c0_0] : memref<8x256xf32, #tpu.memory_space<vmem>>, vector<8x256xf32>
    %cst = arith.constant dense<0.000000e+00> : vector<8xf32>
    %1 = vector.multi_reduction <add>, %0, %cst [1] : vector<8x256xf32> to vector<8xf32>
    %2 = vector.shape_cast %1 : vector<8xf32> to vector<8x1xf32>
    %cst_1 = arith.constant 3.906250e-03 : f32
    %3 = vector.broadcast %cst_1 : f32 to vector<8x1xf32>
    %4 = arith.mulf %2, %3 : vector<8x1xf32>
    %5 = vector.broadcast %4 : vector<8x1xf32> to vector<8x256xf32>
    %6 = arith.subf %0, %5 : vector<8x256xf32>
    %7 = arith.mulf %6, %6 : vector<8x256xf32>
    %cst_2 = arith.constant dense<0.000000e+00> : vector<8xf32>
    %8 = vector.multi_reduction <add>, %7, %cst_2 [1] : vector<8x256xf32> to vector<8xf32>
    %9 = vector.shape_cast %8 : vector<8xf32> to vector<8x1xf32>
    %cst_3 = arith.constant 2.300000e-08 : f32
    %10 = vector.broadcast %cst_3 : f32 to vector<8x1xf32>
    %11 = arith.addf %9, %10 : vector<8x1xf32>
    %cst_4 = arith.constant 3.906250e-03 : f32
    %12 = vector.broadcast %cst_4 : f32 to vector<8x1xf32>
    %13 = arith.mulf %11, %12 : vector<8x1xf32>
    %14 = math.rsqrt %13 : vector<8x1xf32>
    %c0_5 = arith.constant 0 : index
    %c0_6 = arith.constant 0 : index
    %15 = vector.load %arg3[%c0_5, %c0_6] : memref<8x1xf32, #tpu.memory_space<vmem>>, vector<8x1xf32>
    %16 = arith.mulf %15, %14 : vector<8x1xf32>
    %c0_7 = arith.constant 0 : index
    %c0_8 = arith.constant 0 : index
    %17 = vector.load %arg2[%c0_7, %c0_8] : memref<8x1xf32, #tpu.memory_space<vmem>>, vector<8x1xf32>
    %18 = arith.mulf %15, %17 : vector<8x1xf32>
    %19 = vector.broadcast %16 : vector<8x1xf32> to vector<8x256xf32>
    %20 = arith.mulf %6, %19 : vector<8x256xf32>
    %21 = vector.broadcast %18 : vector<8x1xf32> to vector<8x256xf32>
    %22 = arith.addf %20, %21 : vector<8x256xf32>
    %c0_9 = arith.constant 0 : index
    %c0_10 = arith.constant 0 : index
    %23 = vector.load %arg4[%c0_9, %c0_10] : memref<8x256xf32, #tpu.memory_space<vmem>>, vector<8x256xf32>
    tpu.vector_store %arg4[%c0_9, %c0_10], %22 {strides = array<i32>} : memref<8x256xf32, #tpu.memory_space<vmem>>, vector<8x256xf32>,
    return
  }
  func.func @transform_0(%arg0: i32) -> (i32, i32) {
    %c0_i32 = arith.constant 0 : i32
    %c0_i32_0 = arith.constant 0 : i32
    return %arg0, %c0_i32 : i32, i32
  }
  func.func @transform_1(%arg0: i32) -> (i32, i32) {
    %c0_i32 = arith.constant 0 : i32
    %c0_i32_0 = arith.constant 0 : i32
    return %arg0, %c0_i32 : i32, i32
  }
  func.func @transform_2(%arg0: i32) -> (i32, i32) {
    %c0_i32 = arith.constant 0 : i32
    %c0_i32_0 = arith.constant 0 : i32
    return %arg0, %c0_i32 : i32, i32
  }
  func.func @transform_3(%arg0: i32) -> (i32, i32) {
    %c0_i32 = arith.constant 0 : i32
    %c0_i32_0 = arith.constant 0 : i32
    return %arg0, %c0_i32 : i32, i32
  }
}

</mosaic_0001>

<bundles_post_ra>
// kernel: tpu_custom_call.1
= control target key start
LH: loop header
LB: loop body
LE: loop exit
PB: predicated region body
PF: predicated region fallthrough
CT: control target
= control target key end

     0   :  { %s141_s0 = inlined_call_operand.vmem [shape: f32[8,256], index: 0, kind: input, shape index: {}]   ;;  %s142_s1 = inlined_call_operand.vmem [shape: f32[8,1], index: 1, kind: input, shape index: {}]   ;;  %s143_s2 = inlined_call_operand.vmem [shape: f32[8,1], index: 2, kind: input, shape index: {}]   ;;  %s144_s3 = inlined_call_operand.hbm [shape: f32[8,256], index: 3, kind: output, shape index: {}]  }
   0x1   :  { %v15_v0 = vld [vmem:[%s141_s0] sm:$0xff]  ;;  %v16_v1 = vld [vmem:[%s141_s0 + $0x8] sm:$0xff] }
   0x2   :  { %8 = vsyncpa [#allocation3], 0  ;;  %v17_v2 = vadd.f32 %v16_v1, %v15_v0  ;;  %v95_v10 = vmov 0   ;;  %v31_v14 = vld [vmem:[%s143_s2] sm:$0xff]  ;;  %s96_s19 = smov [#allocation2]  }
   0x3   :  { %67 = vset.pattern.permute.xlu1 %v95_v10  ;;  %68 = vset.pattern.permute.xlu0 %v95_v10  ;;  %v33_v16 = vld [vmem:[%s142_s1] sm:$0xff]  ;;  %s57_s20 = sshll.u32 %s96_s19, 4  ;;  %s58_s20 = int_to_ptr.vmem [resolvable:$true] %s57_s20 }
   0x4   :  { %18 = vadd.xlane.f32.xlu0 %v17_v2  ;;  %v34_v18 = vmul.f32 %v33_v16, %v31_v14  ;;  %s71_s2 = scalar_lea.vmem %s58_s20, 256  ;;  %p76_p1 = scmp.lt.s32.totalorder %s58_s20, %s58_s20 }
   0x5   :  { %p72_p0 = scmp.ne.s32.totalorder %s58_s20, %s71_s2  ;;  %p77_p2 = scmp.lt.s32.totalorder %s71_s2, %s71_s2 }
   0x7   :  { %p78_p3 = por %p77_p2, %p76_p1 }
   0x9   :  { %p79_p4 = pnand %p78_p3, %p72_p0 }
  0x91   :  { %v19_v3 = vpop.xlane.xlu0 %18 }
  0x92   :  { %v20_v4 = vmul.f32 0.00390625, %v19_v3 }
  0x94   :  { %v21_v5 = vsub.f32 %v15_v0, %v20_v4  ;;  %v22_v6 = vsub.f32 %v16_v1, %v20_v4 }
  0x96   :  { %v23_v7 = vmul.f32 %v21_v5, %v21_v5  ;;  %v24_v8 = vmul.f32 %v22_v6, %v22_v6 }
  0x98   :  { %v25_v9 = vadd.f32 %v24_v8, %v23_v7 }
  0x9a   :  { %26 = vadd.xlane.f32.xlu0 %v25_v9 }
 0x127   :  { %v27_v11 = vpop.xlane.xlu0 %26 }
 0x128   :  { %v28_v12 = vadd.f32 2.3e-08, %v27_v11 }
 0x12a   :  { %v29_v13 = vmul.f32 0.00390625, %v28_v12 }
 0x12c   :  { %69 = vrsqrt.f32 %v29_v13 }
 0x136   :  { %v70_v15 = vpop.eup %69 }
 0x137   :  { %v32_v17 = vmul.f32 %v70_v15, %v31_v14 }
 0x139   :  { %37 = vperm.xlu1 %67, %v32_v17  }
 0x13d   :  { %44 = vperm.xlu1 %67, %v34_v18  }
 0x1b8   :  { %v38_v19 = vpop.permute.xlu1 %37 }
 0x1b9   :  { %v40_v20 = vmul.f32 %v38_v19, %v21_v5  ;;  %v41_v21 = vmul.f32 %v38_v19, %v22_v6 }
 0x1bc   :  { %v45_v22 = vpop.permute.xlu1 %44 }
 0x1bd   :  { %v47_v23 = vadd.f32 %v45_v22, %v40_v20  ;;  %v48_v24 = vadd.f32 %v45_v22, %v41_v21 }
 0x1bf   :  { %49 = vst [vmem:[#allocation2] sm:$0xff] %v47_v23  ;;  %50 = vst [vmem:[#allocation2 + $0x8] sm:$0xff] %v48_v24 }
 0x1c0   :  { %82 = shalt.err (!%p79_p4)
}
 0x1c1   :  { %s83_s22 = scalar_lea.hbm %s144_s3, 256 }
 0x1c2   :  { %p84_p5 = scmp.ne.s32.totalorder %s144_s3, %s83_s22  ;;  %p87_p6 = scmp.lt.u32.totalorder %s83_s22, %s144_s3 }
 0x1c4   :  { %p89_p7 = pnand %p87_p6, %p84_p5 }
 0x1c6   :  { %92 = shalt.err (!%p89_p7)
}
 0x1c7   :  { %60 = dma.vmem_to_hbm [thread:$0]  %s58_s20, 256, %s144_s3, [#allocation3]  }
 0x1c8   :  { %93 = dma.done.wait [#allocation3], 256  }
 0x1c9   :  { %94 = vsyncadd [#allocation3], 4294967040 }
 0x1ca   :  { %64 = vsyncpa [#allocation3], 1 }

</bundles_post_ra>
